<compile_context>
chip_gen: v7x
topology: tpu7x:2x2x1
jax: 0.10.0
libtpu: 0.0.40
codegen_flags: <defaults>
</compile_context>

<pallas_src>
import jax
import jax.numpy as jnp
from jax.experimental import pallas as pl
from jax.experimental.pallas import tpu as pltpu


def _round_up(x: int, m: int) -> int:
    return (x + m - 1) // m * m


def _convnet_kernel(x_ref, w1_ref, b1_ref, w2_ref, b2_ref, out_ref):
    # Hot path: two MXU matmuls (f32 accumulation) + f32 bias-add + tanh (EUP).
    h = jnp.dot(x_ref[...], w1_ref[...], preferred_element_type=jnp.float32)
    h = jnp.tanh(h + b1_ref[...])                  # [tile_b, dim_hid], f32
    h = h.astype(w2_ref.dtype)                     # bf16 fast path when enabled
    o = jnp.dot(h, w2_ref[...], preferred_element_type=jnp.float32)
    o = jnp.tanh(o + b2_ref[...])                  # [tile_b, dim_out], f32
    out_ref[...] = o.astype(out_ref.dtype)


def prepare_params(w1, b1, w2, b2, *, dot_dtype=jnp.float32):
    """One-time parameter prep (hoisted out of the per-call forward).

    Weights are cast to the MXU input dtype; biases are kept f32 and reshaped to
    (1, N) so the in-kernel bias-add / tanh run in f32 on every chip.
    """
    w1_p = jnp.asarray(w1, dot_dtype)
    w2_p = jnp.asarray(w2, dot_dtype)
    b1_p = jnp.asarray(b1, jnp.float32).reshape(1, -1)
    b2_p = jnp.asarray(b2, jnp.float32).reshape(1, -1)
    return w1_p, b1_p, w2_p, b2_p


def convnet_forward(x, w1, b1, w2, b2, *, tile_b: int = 128):
    """x: [B, dim_in]; w1: [dim_in, dim_hid]; b1: [1, dim_hid];
    w2: [dim_hid, dim_out]; b2: [1, dim_out] -> [B, dim_out] (dtype of x)."""
    B, dim_in = x.shape
    dim_hid = w1.shape[1]
    dim_out = w2.shape[1]

    # Batch tile: multiple of 16 sublanes (bf16 packing), no bigger than needed.
    # With a multi-tile grid the "parallel" batch axis shards across v7x's 2 TCs.
    tile_b = max(16, min(tile_b, _round_up(B, 16)))
    tile_b = _round_up(tile_b, 16)
    B_p = _round_up(B, tile_b)

    if B_p != B:  # only when the batch is not tile-aligned (not in the example)
        x = jnp.zeros((B_p, dim_in), x.dtype).at[:B].set(x)

    grid = (B_p // tile_b,)

    out = pl.pallas_call(
        _convnet_kernel,
        out_shape=jax.ShapeDtypeStruct((B_p, dim_out), x.dtype),
        grid=grid,
        in_specs=[
            # Activations: tiled over batch, auto double-buffered DMA.
            pl.BlockSpec((tile_b, dim_in), lambda i: (i, 0)),
            # Weights / biases: VMEM-resident, DMA'd once -> single buffer.
            pl.BlockSpec((dim_in, dim_hid), lambda i: (0, 0),
                         pipeline_mode=pl.Buffered(1)),
            pl.BlockSpec((1, dim_hid), lambda i: (0, 0),
                         pipeline_mode=pl.Buffered(1)),
            pl.BlockSpec((dim_hid, dim_out), lambda i: (0, 0),
                         pipeline_mode=pl.Buffered(1)),
            pl.BlockSpec((1, dim_out), lambda i: (0, 0),
                         pipeline_mode=pl.Buffered(1)),
        ],
        # Natural-width output store (last block dim == full array dim).
        out_specs=pl.BlockSpec((tile_b, dim_out), lambda i: (i, 0)),
        compiler_params=pltpu.CompilerParams(
            # Batch tiles are independent -> shard across v7x's two TensorCores.
            dimension_semantics=("parallel",),
        ),
    )(x, w1, b1, w2, b2)

    return out if B_p == B else out[:B]


def convnet_ref(x, w1, b1, w2, b2):
    h = jnp.tanh(x @ w1 + b1)
    return jnp.tanh(h @ w2 + b2)


if __name__ == "__main__":
    # Module hyperparams: dim_in -> dim_hid -> dim_out; batch=256 gives two
    # 128-row tiles so the MXU sees real work and the grid stays even for v7x.
    batch, dim_in, dim_hid, dim_out = 256, 32, 64, 16

    key = jax.random.PRNGKey(0)
    kx, k1, kb1, k2, kb2 = jax.random.split(key, 5)

    x = jax.random.normal(kx, (batch, dim_in), dtype=jnp.float32)

    # Deterministic synthetic parameters, stored pre-transposed as [in, out].
    w1 = jax.random.normal(k1, (dim_in, dim_hid), dtype=jnp.float32) * 0.1
    b1 = jax.random.normal(kb1, (1, dim_hid), dtype=jnp.float32) * 0.1
    # TODO(synk): linear_2 is never defined in the original __init__ (legacy bug);
    # parameters below are synthetic with the shape implied by forward().
    w2 = jax.random.normal(k2, (dim_hid, dim_out), dtype=jnp.float32) * 0.1
    b2 = jax.random.normal(kb2, (1, dim_out), dtype=jnp.float32) * 0.1

    ref = convnet_ref(x, w1, b1, w2, b2)
    fwd = jax.jit(convnet_forward, static_argnames=("tile_b",))

    # f32 path: exact check against the JAX reference.
    params_f32 = prepare_params(w1, b1, w2, b2, dot_dtype=jnp.float32)
    out = jax.block_until_ready(fwd(x, *params_f32))
    assert out.shape == (batch, dim_out)
    assert jnp.allclose(out, ref, atol=1e-5, rtol=1e-5), "f32 mismatch vs. reference"

    # bf16 path (fast MXU path on v6e/v7x; halves the batch-scaling HBM traffic).
    params_bf16 = prepare_params(w1, b1, w2, b2, dot_dtype=jnp.bfloat16)
    out_bf16 = jax.block_until_ready(fwd(x.astype(jnp.bfloat16), *params_bf16))
    assert out_bf16.shape == (batch, dim_out)
    assert jnp.allclose(out_bf16.astype(jnp.float32), ref, atol=3e-2, rtol=3e-2), \
        "bf16 mismatch vs. reference"

    print("KERNEL_OK")
</pallas_src>

<mosaic_0001>
module attributes {stable_mosaic.version = 11 : i64} {
  func.func @_convnet_kernel(%arg0: i32, %arg1: memref<128x32xf32, #tpu.memory_space<vmem>>, %arg2: memref<32x64xf32, #tpu.memory_space<vmem>>, %arg3: memref<1x64xf32, #tpu.memory_space<vmem>>, %arg4: memref<64x16xf32, #tpu.memory_space<vmem>>, %arg5: memref<1x16xf32, #tpu.memory_space<vmem>>, %arg6: memref<128x16xf32, #tpu.memory_space<vmem>>) attributes {dimension_semantics = [#tpu.dimension_semantics<parallel>], iteration_bounds = array<i64: 2>, scalar_prefetch = 0 : i64, scratch_operands = 0 : i64, tpu.core_type = #tpu.core_type<tc>, window_params = [{transform_indices = @transform_0, window_bounds = array<i64: 128, 32>}, {pipeline_mode = #tpu.pipeline_mode<synchronous>, transform_indices = @transform_1, window_bounds = array<i64: 32, 64>}, {pipeline_mode = #tpu.pipeline_mode<synchronous>, transform_indices = @transform_2, window_bounds = array<i64: 1, 64>}, {pipeline_mode = #tpu.pipeline_mode<synchronous>, transform_indices = @transform_3, window_bounds = array<i64: 64, 16>}, {pipeline_mode = #tpu.pipeline_mode<synchronous>, transform_indices = @transform_4, window_bounds = array<i64: 1, 16>}, {transform_indices = @transform_5, window_bounds = array<i64: 128, 16>}]} {
    %c0 = arith.constant 0 : index
    %c0_0 = arith.constant 0 : index
    %0 = vector.load %arg1[%c0, %c0_0] : memref<128x32xf32, #tpu.memory_space<vmem>>, vector<128x32xf32>
    %c0_1 = arith.constant 0 : index
    %c0_2 = arith.constant 0 : index
    %1 = vector.load %arg2[%c0_1, %c0_2] : memref<32x64xf32, #tpu.memory_space<vmem>>, vector<32x64xf32>
    %cst = arith.constant dense<0.000000e+00> : vector<128x64xf32>
    %2 = tpu.matmul %0, %1, %cst {dimension_numbers = #tpu.dot_dimension_numbers<[1], [0], [0], [1], [0, 0, 1, 1], [], []>} : vector<128x32xf32>, vector<32x64xf32>, vector<128x64xf32> -> vector<128x64xf32>
    %c0_3 = arith.constant 0 : index
    %c0_4 = arith.constant 0 : index
    %3 = vector.load %arg3[%c0_3, %c0_4] : memref<1x64xf32, #tpu.memory_space<vmem>>, vector<1x64xf32>
    %4 = vector.broadcast %3 : vector<1x64xf32> to vector<128x64xf32>
    %5 = arith.addf %2, %4 : vector<128x64xf32>
    %6 = math.tanh %5 : vector<128x64xf32>
    %c0_5 = arith.constant 0 : index
    %c0_6 = arith.constant 0 : index
    %7 = vector.load %arg4[%c0_5, %c0_6] : memref<64x16xf32, #tpu.memory_space<vmem>>, vector<64x16xf32>
    %cst_7 = arith.constant dense<0.000000e+00> : vector<128x16xf32>
    %8 = tpu.matmul %6, %7, %cst_7 {dimension_numbers = #tpu.dot_dimension_numbers<[1], [0], [0], [1], [0, 0, 1, 1], [], []>} : vector<128x64xf32>, vector<64x16xf32>, vector<128x16xf32> -> vector<128x16xf32>
    %c0_8 = arith.constant 0 : index
    %c0_9 = arith.constant 0 : index
    %9 = vector.load %arg5[%c0_8, %c0_9] : memref<1x16xf32, #tpu.memory_space<vmem>>, vector<1x16xf32>
    %10 = vector.broadcast %9 : vector<1x16xf32> to vector<128x16xf32>
    %11 = arith.addf %8, %10 : vector<128x16xf32>
    %12 = math.tanh %11 : vector<128x16xf32>
    %c0_10 = arith.constant 0 : index
    %c0_11 = arith.constant 0 : index
    %13 = vector.load %arg6[%c0_10, %c0_11] : memref<128x16xf32, #tpu.memory_space<vmem>>, vector<128x16xf32>
    tpu.vector_store %arg6[%c0_10, %c0_11], %12 {strides = array<i32>} : memref<128x16xf32, #tpu.memory_space<vmem>>, vector<128x16xf32>,
    return
  }
  func.func @transform_0(%arg0: i32) -> (i32, i32) {
    %c0_i32 = arith.constant 0 : i32
    %c0_i32_0 = arith.constant 0 : i32
    return %arg0, %c0_i32 : i32, i32
  }
  func.func @transform_1(%arg0: i32) -> (i32, i32) {
    %c0_i32 = arith.constant 0 : i32
    %c0_i32_0 = arith.constant 0 : i32
    %c0_i32_1 = arith.constant 0 : i32
    return %c0_i32, %c0_i32_0 : i32, i32
  }
  func.func @transform_2(%arg0: i32) -> (i32, i32) {
    %c0_i32 = arith.constant 0 : i32
    %c0_i32_0 = arith.constant 0 : i32
    %c0_i32_1 = arith.constant 0 : i32
    return %c0_i32, %c0_i32_0 : i32, i32
  }
  func.func @transform_3(%arg0: i32) -> (i32, i32) {
    %c0_i32 = arith.constant 0 : i32
    %c0_i32_0 = arith.constant 0 : i32
    %c0_i32_1 = arith.constant 0 : i32
    return %c0_i32, %c0_i32_0 : i32, i32
  }
  func.func @transform_4(%arg0: i32) -> (i32, i32) {
    %c0_i32 = arith.constant 0 : i32
    %c0_i32_0 = arith.constant 0 : i32
    %c0_i32_1 = arith.constant 0 : i32
    return %c0_i32, %c0_i32_0 : i32, i32
  }
  func.func @transform_5(%arg0: i32) -> (i32, i32) {
    %c0_i32 = arith.constant 0 : i32
    %c0_i32_0 = arith.constant 0 : i32
    return %arg0, %c0_i32 : i32, i32
  }
}

</mosaic_0001>

<bundles_post_ra>
// kernel: convnet_forward.1
= control target key start
LH: loop header
LB: loop body
LE: loop exit
PB: predicated region body
PF: predicated region fallthrough
CT: control target
= control target key end

     0   :  { %s1066_s18 = smov 0   ;;  %s1252_s0 = inlined_call_operand.vmem [shape: f32[256,32], index: 0, kind: input, shape index: {}]   ;;  %s1253_s1 = inlined_call_operand.vmem [shape: f32[32,64], index: 1, kind: input, shape index: {}]   ;;  %s1254_s2 = inlined_call_operand.vmem [shape: f32[1,64], index: 2, kind: input, shape index: {}]   ;;  %s1255_s3 = inlined_call_operand.vmem [shape: f32[64,16], index: 3, kind: input, shape index: {}]   ;;  %s1256_s4 = inlined_call_operand.vmem [shape: f32[1,16], index: 4, kind: input, shape index: {}]   ;;  %s1257_s5 = inlined_call_operand.vmem [shape: f32[256,16], index: 5, kind: output, shape index: {}]  }
   0x1 LB: > { %s763_s19 = sadd.s32 4294967295, %s1034_s18   ;;  %p767_p0 = scmp.ge.s32.totalorder %s1034_s18, 1  ;;  %s1034_s18 = sphi %s1066_s18, %s15_s18  }
   0x2   : > { %p188_p1 = scmp.lt.s32.totalorder %s1034_s18, 3 }
   0x4   : > { %p189_p2 = pnand %p767_p0, %p188_p1 }
   0x5   : > { %v244_v0 = vld [vmem:[%s1253_s1] sm:$0xff] (!%p189_p2)  ;;  %v245_v1 = vld [vmem:[%s1253_s1 + $0x8] sm:$0xff] (!%p189_p2)  ;;  %v246_v2 = vld [vmem:[%s1253_s1 + $0x10] sm:$0xff] (!%p189_p2)  ;;  %s768_s26 = sshll.u32 (!%p189_p2), %s763_s19, 4  ;;  %vm255_vm0 = vcmask (!%p189_p2), 261120   ;;  %vm480_vm1 = vcmask (!%p189_p2), 523264  }
   0x6   : > { %192 = sbr.rel (%p189_p2) target bundleno = 500 (0x1f4), region = 40  ;;  %v924_v3 = vpack.c.bf16 (!%p189_p2), %v245_v1, %v244_v0  ;;  %v247_v4 = vld [vmem:[%s1253_s1 + $0x18] sm:$0xff] (!%p189_p2)  ;;  %p217_p3 = scmp.lt.s32.totalorder (!%p189_p2), %s768_s26, 31  ;;  %v465_v22 = vld [vmem:[%s1255_s3] sm:$0xff] (!%p189_p2)  ;;  %v466_v23 = vld [vmem:[%s1255_s3 + $0x8] sm:$0xff] (!%p189_p2)  ;;  %vm690_vm2 = vcmask (!%p189_p2), 130048  }
   0x7   : > { %v928_v5 = vpack.c.bf16 (!%p189_p2), %v247_v4, %v246_v2  ;;  %v932_v24 = vpack.c.bf16 (!%p189_p2), %v466_v23, %v465_v22  ;;  %v467_v25 = vld [vmem:[%s1255_s3 + $0x10] sm:$0xff] (!%p189_p2)  ;;  %v468_v26 = vld [vmem:[%s1255_s3 + $0x18] sm:$0xff] (!%p189_p2)  ;;  %v469_v28 = vld [vmem:[%s1255_s3 + $0x20] sm:$0xff] (!%p189_p2) }
   0x8   : > { %925 = vmatprep.subr.bf16.mxu0 (!%p189_p2), %v924_v3  ;;  %v936_v27 = vpack.c.bf16 (!%p189_p2), %v468_v26, %v467_v25  ;;  %v470_v29 = vld [vmem:[%s1255_s3 + $0x28] sm:$0xff] (!%p189_p2)  ;;  %v471_v31 = vld [vmem:[%s1255_s3 + $0x30] sm:$0xff] (!%p189_p2)  ;;  %v472_v32 = vld [vmem:[%s1255_s3 + $0x38] sm:$0xff] (!%p189_p2) }
   0x9   : > { %927 = vmatpush3.bf16.msra.mxu0 (!%p189_p2), %v924_v3  ;;  %948 = vmatprep.subr.bf16.mxu1 (!%p189_p2), %v932_v24  ;;  %v940_v30 = vpack.c.bf16 (!%p189_p2), %v470_v29, %v469_v28  ;;  %v944_v33 = vpack.c.bf16 (!%p189_p2), %v472_v32, %v471_v31  ;;  %v1155_v34 = vld [vmem:[%s1254_s2] ss:$0 sm:$0xff] (!%p189_p2) }
   0xa   : > { %929 = vmatprep.subr.bf16.mxu0 (!%p189_p2), %v928_v5  ;;  %952 = vmatpush3.bf16.msra.mxu1 (!%p189_p2), %v932_v24 }
   0xb   : > { %949 = vmatprep.subr.bf16.mxu1 (!%p189_p2), %v936_v27 }
   0xd   : > { %s1259_s26 = smov (!%p217_p3, %s768_s26), 31  ;;  %931 = vmatpush3.bf16.msra.mxu0 %v928_v5 }
   0xe   : > { %s769_s29 = sshll.u32 %s1259_s26, 3  ;;  %933 = vmatprep.subr.bf16.mxu0 %v932_v24  ;;  %953 = vmatpush3.bf16.msra.mxu1 %v936_v27 }
   0xf   : > { %s1094_s7 = scalar_lea.vmem %s1252_s0, %s769_s29  ;;  %950 = vmatprep.subr.bf16.mxu1 %v940_v30  ;;  %s1205_s8 = scalar_lea.vmem %s1257_s5, %s769_s29 }
  0x10   : > { %v228_v6 = vld [vmem:[%s1094_s7] sm:$0xff]  ;;  %v229_v7 = vld [vmem:[%s1094_s7 + $0x8] sm:$0xff]  ;;  %v230_v8 = vld [vmem:[%s1094_s7 + $0x10] sm:$0xff] }
  0x11   : > { %860 = vmatprep.mubr.msk.f32.mxu0 %vm255_vm0, %v228_v6  ;;  %v231_v9 = vld [vmem:[%s1094_s7 + $0x18] sm:$0xff]  ;;  %v232_v10 = vld [vmem:[%s1094_s7 + $0x20] sm:$0xff]  ;;  %v233_v11 = vld [vmem:[%s1094_s7 + $0x28] sm:$0xff] }
  0x12   : > { %861 = vmatmul.mubr.msk.f32.vlgmr.msra.gmra.mrb[0].mxu0 %vm255_vm0, %v229_v7  ;;  %v234_v12 = vld [vmem:[%s1094_s7 + $0x30] sm:$0xff]  ;;  %v235_v13 = vld [vmem:[%s1094_s7 + $0x38] sm:$0xff]  ;;  %v236_v14 = vld [vmem:[%s1094_s7 + $0x40] sm:$0xff]  ;;  %954 = vmatpush3.bf16.msra.mxu1 %v940_v30 }
  0x13   : > { %863 = vmatprep.mubr.msk.f32.mxu0 %vm255_vm0, %v230_v8  ;;  %v237_v15 = vld [vmem:[%s1094_s7 + $0x48] sm:$0xff]  ;;  %v238_v16 = vld [vmem:[%s1094_s7 + $0x50] sm:$0xff]  ;;  %v239_v17 = vld [vmem:[%s1094_s7 + $0x58] sm:$0xff]  ;;  %935 = vmatpush3.bf16.msra.mxu0 %v932_v24 }
  0x14   : > { %v240_v18 = vld [vmem:[%s1094_s7 + $0x60] sm:$0xff]  ;;  %v241_v19 = vld [vmem:[%s1094_s7 + $0x68] sm:$0xff]  ;;  %v242_v20 = vld [vmem:[%s1094_s7 + $0x70] sm:$0xff]  ;;  %937 = vmatprep.subr.bf16.mxu0 %v936_v27  ;;  %951 = vmatprep.subr.bf16.mxu1 %v944_v33 }
  0x15   : > { %v243_v21 = vld [vmem:[%s1094_s7 + $0x78] sm:$0xff] }
  0x16   : > { %864 = vmatmul.mubr.msk.f32.gmra.mrb[2].mxu0 %vm255_vm0, %v231_v9  ;;  %955 = vmatpush3.bf16.msra.mxu1 %v944_v33 }
  0x17   : > { %866 = vmatprep.mubr.msk.f32.mxu0 %vm255_vm0, %v232_v10  ;;  %939 = vmatpush3.bf16.msra.mxu0 %v936_v27 }
  0x18   : > { %941 = vmatprep.subr.bf16.mxu0 %v940_v30 }
  0x1a   : > { %867 = vmatmul.mubr.msk.f32.gmra.mrb[4].mxu0 %vm255_vm0, %v233_v11 }
  0x1b   : > { %869 = vmatprep.mubr.msk.f32.mxu0 %vm255_vm0, %v234_v12  ;;  %943 = vmatpush3.bf16.msra.mxu0 %v940_v30 }
  0x1c   : > { %945 = vmatprep.subr.bf16.mxu0 %v944_v33 }
  0x1e   : > { %870 = vmatmul.mubr.msk.f32.gmra.mrb[6].mxu0 %vm255_vm0, %v235_v13 }
  0x1f   : > { %872 = vmatprep.mubr.msk.f32.mxu0 %vm255_vm0, %v236_v14  ;;  %947 = vmatpush3.bf16.msra.mxu0 %v944_v33 }
  0x22   : > { %873 = vmatmul.mubr.msk.f32.gmra.mrb[8].mxu0 %vm255_vm0, %v237_v15 }
  0x23   : > { %875 = vmatprep.mubr.msk.f32.mxu0 %vm255_vm0, %v238_v16 }
  0x26   : > { %876 = vmatmul.mubr.msk.f32.gmra.mrb[10].mxu0 %vm255_vm0, %v239_v17 }
  0x27   : > { %878 = vmatprep.mubr.msk.f32.mxu0 %vm255_vm0, %v240_v18 }
  0x2a   : > { %879 = vmatmul.mubr.msk.f32.gmra.mrb[12].mxu0 %vm255_vm0, %v241_v19  ;;  %v1192_v19 = vld [vmem:[%s1256_s4] ss:$0 sm:$0xff] }
  0x2b   : > { %881 = vmatprep.mubr.msk.f32.mxu0 %vm255_vm0, %v242_v20 }
  0x2e   : > { %882 = vmatmul.mubr.msk.f32.gmra.mrb[14].mxu0 %vm255_vm0, %v243_v21 }
  0xe5   : > { %v862_v35 = vpop.f32.mrb[0].mxu0 }
  0xe6   : > { %v376_v36 = vadd.f32 %v862_v35, %v1155_v34  ;;  %v370_v37 = vpop.f32.mrb[1].mxu0 }
  0xe7   : > { %v371_v38 = vadd.f32 %v1155_v34, %v370_v37 }
  0xe9   : > { %964 = vtanh.f32 %v371_v38  ;;  %v865_v39 = vpop.f32.mrb[2].mxu0 }
  0xea   : > { %966 = vtanh.f32 %v376_v36  ;;  %v386_v40 = vadd.f32 %v865_v39, %v1155_v34  ;;  %v380_v41 = vpop.f32.mrb[3].mxu0 }
  0xeb   : > { %v381_v42 = vadd.f32 %v1155_v34, %v380_v41 }
  0xed   : > { %968 = vtanh.f32 %v381_v42  ;;  %v868_v43 = vpop.f32.mrb[4].mxu0 }
  0xee   : > { %970 = vtanh.f32 %v386_v40  ;;  %v396_v44 = vadd.f32 %v868_v43, %v1155_v34  ;;  %v390_v45 = vpop.f32.mrb[5].mxu0 }
  0xef   : > { %v391_v46 = vadd.f32 %v1155_v34, %v390_v45 }
  0xf1   : > { %972 = vtanh.f32 %v391_v46  ;;  %v871_v47 = vpop.f32.mrb[6].mxu0 }
  0xf2   : > { %974 = vtanh.f32 %v396_v44  ;;  %v406_v48 = vadd.f32 %v871_v47, %v1155_v34  ;;  %v400_v49 = vpop.f32.mrb[7].mxu0 }
  0xf3   : > { %v965_v50 = vpop.eup %964  ;;  %v401_v51 = vadd.f32 %v1155_v34, %v400_v49 }
  0xf4   : > { %v967_v52 = vpop.eup %966  ;;  %900 = vmatprep.mubr.msk.f32.mxu0 %vm480_vm1, %v965_v50 }
  0xf5   : > { %976 = vtanh.f32 %v401_v51  ;;  %v874_v53 = vpop.f32.mrb[8].mxu0  ;;  %901 = vmatmul.mubr.msk.f32.vlgmr.msra.gmra.mrb[16].mxu0 %vm480_vm1, %v967_v52 }
  0xf6   : > { %978 = vtanh.f32 %v406_v48  ;;  %v416_v54 = vadd.f32 %v874_v53, %v1155_v34  ;;  %v410_v55 = vpop.f32.mrb[9].mxu0 }
  0xf7   : > { %v969_v56 = vpop.eup %968  ;;  %v411_v57 = vadd.f32 %v1155_v34, %v410_v55 }
  0xf8   : > { %v971_v58 = vpop.eup %970  ;;  %903 = vmatprep.mubr.msk.f32.mxu1 %vm480_vm1, %v969_v56 }
  0xf9   : > { %980 = vtanh.f32 %v411_v57  ;;  %v877_v59 = vpop.f32.mrb[10].mxu0  ;;  %904 = vmatmul.mubr.msk.f32.vlgmr.msra.gmra.mrb[0].mxu1 %vm480_vm1, %v971_v58 }
  0xfa   : > { %982 = vtanh.f32 %v416_v54  ;;  %v426_v60 = vadd.f32 %v877_v59, %v1155_v34  ;;  %v420_v61 = vpop.f32.mrb[11].mxu0 }
  0xfb   : > { %v973_v62 = vpop.eup %972  ;;  %v421_v63 = vadd.f32 %v1155_v34, %v420_v61 }
  0xfc   : > { %v975_v0 = vpop.eup %974  ;;  %906 = vmatprep.mubr.msk.f32.mxu1 %vm480_vm1, %v973_v62 }
  0xfd   : > { %984 = vtanh.f32 %v421_v63  ;;  %v880_v1 = vpop.f32.mrb[12].mxu0  ;;  %907 = vmatmul.mubr.msk.f32.gmra.mrb[2].mxu1 %vm480_vm1, %v975_v0 }
  0xfe   : > { %986 = vtanh.f32 %v426_v60  ;;  %v436_v2 = vadd.f32 %v880_v1, %v1155_v34  ;;  %v430_v3 = vpop.f32.mrb[13].mxu0 }
  0xff   : > { %v977_v4 = vpop.eup %976  ;;  %v431_v5 = vadd.f32 %v1155_v34, %v430_v3 }
 0x100   : > { %v979_v6 = vpop.eup %978  ;;  %909 = vmatprep.mubr.msk.f32.mxu1 %vm480_vm1, %v977_v4 }
 0x101   : > { %988 = vtanh.f32 %v431_v5  ;;  %v883_v7 = vpop.f32.mrb[14].mxu0  ;;  %910 = vmatmul.mubr.msk.f32.gmra.mrb[4].mxu1 %vm480_vm1, %v979_v6 }
 0x102   : > { %990 = vtanh.f32 %v436_v2  ;;  %v446_v8 = vadd.f32 %v883_v7, %v1155_v34  ;;  %v440_v9 = vpop.f32.mrb[15].mxu0 }
 0x103   : > { %v981_v10 = vpop.eup %980  ;;  %v441_v11 = vadd.f32 %v1155_v34, %v440_v9 }
 0x104   : > { %v983_v12 = vpop.eup %982  ;;  %912 = vmatprep.mubr.msk.f32.mxu1 %vm480_vm1, %v981_v10 }
 0x105   : > { %992 = vtanh.f32 %v441_v11  ;;  %913 = vmatmul.mubr.msk.f32.gmra.mrb[6].mxu1 %vm480_vm1, %v983_v12 }
 0x106   : > { %994 = vtanh.f32 %v446_v8 }
 0x107   : > { %v985_v13 = vpop.eup %984 }
 0x108   : > { %v987_v14 = vpop.eup %986  ;;  %915 = vmatprep.mubr.msk.f32.mxu1 %vm480_vm1, %v985_v13 }
 0x109   : > { %916 = vmatmul.mubr.msk.f32.gmra.mrb[8].mxu1 %vm480_vm1, %v987_v14 }
 0x10b   : > { %v989_v15 = vpop.eup %988 }
 0x10c   : > { %v991_v16 = vpop.eup %990  ;;  %918 = vmatprep.mubr.msk.f32.mxu1 %vm480_vm1, %v989_v15 }
 0x10d   : > { %919 = vmatmul.mubr.msk.f32.gmra.mrb[10].mxu1 %vm480_vm1, %v991_v16 }
 0x10f   : > { %v993_v17 = vpop.eup %992 }
 0x110   : > { %v995_v18 = vpop.eup %994  ;;  %921 = vmatprep.mubr.msk.f32.mxu1 %vm480_vm1, %v993_v17 }
 0x111   : > { %922 = vmatmul.mubr.msk.f32.gmra.mrb[12].mxu1 %vm480_vm1, %v995_v18 }
 0x1c8   : > { %v902_v20 = vpop.f32.mrb[16].mxu0 }
 0x1c9   : > { %v601_v21 = vadd.f32 %v902_v20, %v1192_v19  ;;  %v595_v22 = vpop.f32.mrb[17].mxu0 }
 0x1ca   : > { %v596_v23 = vadd.f32 %v1192_v19, %v595_v22 }
 0x1cb   : > { %996 = vtanh.f32 %v601_v21 }
 0x1cc   : > { %998 = vtanh.f32 %v596_v23  ;;  %v905_v24 = vpop.f32.mrb[0].mxu1 }
 0x1cd   : > { %v611_v25 = vadd.f32 %v905_v24, %v1192_v19  ;;  %v605_v26 = vpop.f32.mrb[1].mxu1 }
 0x1ce   : > { %v606_v27 = vadd.f32 %v1192_v19, %v605_v26 }
 0x1cf   : > { %1000 = vtanh.f32 %v611_v25 }
 0x1d0   : > { %1002 = vtanh.f32 %v606_v27  ;;  %v908_v28 = vpop.f32.mrb[2].mxu1 }
 0x1d1   : > { %v621_v29 = vadd.f32 %v908_v28, %v1192_v19  ;;  %v615_v30 = vpop.f32.mrb[3].mxu1 }
 0x1d2   : > { %v616_v31 = vadd.f32 %v1192_v19, %v615_v30 }
 0x1d3   : > { %1004 = vtanh.f32 %v621_v29 }
 0x1d4   : > { %1006 = vtanh.f32 %v616_v31  ;;  %v911_v32 = vpop.f32.mrb[4].mxu1 }
 0x1d5   : > { %v997_v33 = vpop.eup %996  ;;  %v631_v34 = vadd.f32 %v911_v32, %v1192_v19  ;;  %v625_v35 = vpop.f32.mrb[5].mxu1 }
 0x1d6   : > { %v999_v36 = vpop.eup %998  ;;  %692 = vst.msk [vmem:[%s1205_s8 + $0x8] sm:$0xff] %vm690_vm2, %v997_v33  ;;  %v626_v37 = vadd.f32 %v1192_v19, %v625_v35 }
 0x1d7   : > { %691 = vst.msk [vmem:[%s1205_s8] sm:$0xff] %vm690_vm2, %v999_v36  ;;  %1008 = vtanh.f32 %v631_v34 }
 0x1d8   : > { %1010 = vtanh.f32 %v626_v37  ;;  %v914_v38 = vpop.f32.mrb[6].mxu1 }
 0x1d9   : > { %v1001_v39 = vpop.eup %1000  ;;  %v641_v40 = vadd.f32 %v914_v38, %v1192_v19  ;;  %v635_v41 = vpop.f32.mrb[7].mxu1 }
 0x1da   : > { %v1003_v42 = vpop.eup %1002  ;;  %694 = vst.msk [vmem:[%s1205_s8 + $0x18] sm:$0xff] %vm690_vm2, %v1001_v39  ;;  %v636_v43 = vadd.f32 %v1192_v19, %v635_v41 }
 0x1db   : > { %693 = vst.msk [vmem:[%s1205_s8 + $0x10] sm:$0xff] %vm690_vm2, %v1003_v42  ;;  %1012 = vtanh.f32 %v641_v40 }
 0x1dc   : > { %1014 = vtanh.f32 %v636_v43  ;;  %v917_v44 = vpop.f32.mrb[8].mxu1 }
 0x1dd   : > { %v1005_v45 = vpop.eup %1004  ;;  %v651_v46 = vadd.f32 %v917_v44, %v1192_v19  ;;  %v645_v47 = vpop.f32.mrb[9].mxu1 }
 0x1de   : > { %v1007_v48 = vpop.eup %1006  ;;  %696 = vst.msk [vmem:[%s1205_s8 + $0x28] sm:$0xff] %vm690_vm2, %v1005_v45  ;;  %v646_v49 = vadd.f32 %v1192_v19, %v645_v47 }
 0x1df   : > { %695 = vst.msk [vmem:[%s1205_s8 + $0x20] sm:$0xff] %vm690_vm2, %v1007_v48  ;;  %1016 = vtanh.f32 %v651_v46 }
 0x1e0   : > { %1018 = vtanh.f32 %v646_v49  ;;  %v920_v50 = vpop.f32.mrb[10].mxu1 }
 0x1e1   : > { %v1009_v51 = vpop.eup %1008  ;;  %v661_v52 = vadd.f32 %v920_v50, %v1192_v19  ;;  %v655_v53 = vpop.f32.mrb[11].mxu1 }
 0x1e2   : > { %v1011_v54 = vpop.eup %1010  ;;  %698 = vst.msk [vmem:[%s1205_s8 + $0x38] sm:$0xff] %vm690_vm2, %v1009_v51  ;;  %v656_v55 = vadd.f32 %v1192_v19, %v655_v53 }
 0x1e3   : > { %697 = vst.msk [vmem:[%s1205_s8 + $0x30] sm:$0xff] %vm690_vm2, %v1011_v54  ;;  %1020 = vtanh.f32 %v661_v52 }
 0x1e4   : > { %1022 = vtanh.f32 %v656_v55  ;;  %v923_v56 = vpop.f32.mrb[12].mxu1 }
 0x1e5   : > { %v1013_v57 = vpop.eup %1012  ;;  %v671_v58 = vadd.f32 %v923_v56, %v1192_v19  ;;  %v665_v59 = vpop.f32.mrb[13].mxu1 }
 0x1e6   : > { %v1015_v60 = vpop.eup %1014  ;;  %700 = vst.msk [vmem:[%s1205_s8 + $0x48] sm:$0xff] %vm690_vm2, %v1013_v57  ;;  %v666_v61 = vadd.f32 %v1192_v19, %v665_v59 }
 0x1e7   : > { %699 = vst.msk [vmem:[%s1205_s8 + $0x40] sm:$0xff] %vm690_vm2, %v1015_v60  ;;  %1024 = vtanh.f32 %v671_v58 }
 0x1e8   : > { %1026 = vtanh.f32 %v666_v61 }
 0x1e9   : > { %v1017_v62 = vpop.eup %1016 }
 0x1ea   : > { %v1019_v63 = vpop.eup %1018  ;;  %702 = vst.msk [vmem:[%s1205_s8 + $0x58] sm:$0xff] %vm690_vm2, %v1017_v62 }
 0x1eb   : > { %701 = vst.msk [vmem:[%s1205_s8 + $0x50] sm:$0xff] %vm690_vm2, %v1019_v63 }
 0x1ed   : > { %v1021_v0 = vpop.eup %1020 }
 0x1ee   : > { %v1023_v1 = vpop.eup %1022  ;;  %704 = vst.msk [vmem:[%s1205_s8 + $0x68] sm:$0xff] %vm690_vm2, %v1021_v0 }
 0x1ef   : > { %703 = vst.msk [vmem:[%s1205_s8 + $0x60] sm:$0xff] %vm690_vm2, %v1023_v1 }
 0x1f1   : > { %v1025_v2 = vpop.eup %1024 }
 0x1f2   : > { %v1027_v3 = vpop.eup %1026  ;;  %706 = vst.msk [vmem:[%s1205_s8 + $0x78] sm:$0xff] %vm690_vm2, %v1025_v2 }
 0x1f3   : > { %705 = vst.msk [vmem:[%s1205_s8 + $0x70] sm:$0xff] %vm690_vm2, %v1027_v3 }
 0x1f4 PF: > { %s15_s18 = sadd.s32 1, %s1034_s18  }
 0x1f5   : > { %p12_p4 = scmp.ge.s32.totalorder %s15_s18, 4  }
 0x1f7   :  { %14 = sbr.rel (!%p12_p4) target bundleno = 1 (0x1), region = 70 }

</bundles_post_ra>
